<compile_context>
chip_gen: v6e
topology: v6e:2x2x1
jax: 0.10.0
libtpu: 0.0.40
codegen_flags: <defaults>
</compile_context>

<pallas_src>
import jax
import jax.numpy as jnp
from jax.experimental import pallas as pl
from jax.experimental.pallas import tpu as pltpu


def _row_loss_single_pass_kernel(x_ref, y_ref, out_ref):
    """Whole class axis resident: plain numerically-stable log-softmax."""
    x = x_ref[...].astype(jnp.float32)          # (tile_n, C)
    y = y_ref[...].astype(jnp.float32)          # (tile_n, C)
    m = jnp.max(x, axis=-1, keepdims=True)
    shifted = x - m
    lse = jnp.log(jnp.sum(jnp.exp(shifted), axis=-1, keepdims=True))
    lsm = shifted - lse                         # log_softmax(logits, dim=1)
    out_ref[...] = jnp.sum(-lsm * y, axis=-1, keepdims=True)   # (tile_n, 1)


def _row_loss_streaming_kernel(x_ref, y_ref, out_ref,
                               m_ref, l_ref, sy_ref, sxy_ref):
    """Class axis tiled: online logsumexp carried in per-row VMEM scratch.

    Uses  sum_c y_c*(lse(x) - x_c) = lse(x)*sum_c y_c - sum_c y_c*x_c,
    so only four per-row scalars are carried across class tiles.
    """
    j = pl.program_id(1)

    @pl.when(j == 0)
    def _():
        m_ref[...] = jnp.full(m_ref.shape, -jnp.inf, dtype=jnp.float32)
        l_ref[...] = jnp.zeros(l_ref.shape, dtype=jnp.float32)
        sy_ref[...] = jnp.zeros(sy_ref.shape, dtype=jnp.float32)
        sxy_ref[...] = jnp.zeros(sxy_ref.shape, dtype=jnp.float32)

    x = x_ref[...].astype(jnp.float32)          # (tile_n, tile_c)
    y = y_ref[...].astype(jnp.float32)          # (tile_n, tile_c)

    m_prev = m_ref[...]
    m_new = jnp.maximum(m_prev, jnp.max(x, axis=-1, keepdims=True))
    l_ref[...] = (l_ref[...] * jnp.exp(m_prev - m_new)
                  + jnp.sum(jnp.exp(x - m_new), axis=-1, keepdims=True))
    m_ref[...] = m_new
    sy_ref[...] += jnp.sum(y, axis=-1, keepdims=True)
    sxy_ref[...] += jnp.sum(x * y, axis=-1, keepdims=True)

    @pl.when(j == pl.num_programs(1) - 1)
    def _():
        lse = m_ref[...] + jnp.log(l_ref[...])               # (tile_n, 1)
        out_ref[...] = lse * sy_ref[...] - sxy_ref[...]      # (tile_n, 1)


def _largest_divisor_tile(dim, max_tile, multiple):
    """Largest divisor of `dim` that is <= max_tile and a multiple of
    `multiple`; falls back to the full dim (always a legal block extent)."""
    best = None
    limit = min(max_tile, dim)
    t = multiple
    while t <= limit:
        if dim % t == 0:
            best = t
        t += multiple
    return best if best is not None else dim


def soft_cross_entropy_loss(logits, labels, *, tile_n=None, tile_c=None,
                            block_byte_budget=2 * 1024 * 1024,
                            vmem_limit_bytes=32 * 1024 * 1024):
    """(-log_softmax(logits, axis=1) * labels).mean(); logits/labels: [N, C]."""
    N, C = logits.shape
    assert labels.shape == (N, C)
    itemsize = max(jnp.dtype(logits.dtype).itemsize,
                   jnp.dtype(labels.dtype).itemsize)

    # ---- tile selection (HBM-bound: target ~2 MiB per input block) ----
    if tile_c is None:
        # Keep the whole class axis resident unless even an 8-row block of the
        # full row exceeds the per-block budget (vocab-sized C).
        if 8 * C * itemsize <= block_byte_budget:
            tile_c = C
        else:
            tile_c = _largest_divisor_tile(C, max_tile=8192, multiple=128)
    if tile_n is None:
        padded_c = ((tile_c + 127) // 128) * 128          # VMEM lane padding
        rows_budget = max(8, block_byte_budget // (padded_c * itemsize))
        tile_n = _largest_divisor_tile(N, max_tile=min(rows_budget, 4096),
                                       multiple=8)

    assert C % tile_c == 0 and (tile_c % 128 == 0 or tile_c == C), (tile_c, C)
    assert N % tile_n == 0 and (tile_n % 8 == 0 or tile_n == N), (tile_n, N)
    num_n = N // tile_n
    num_c = C // tile_c

    out_shape = jax.ShapeDtypeStruct((N, 1), jnp.float32)
    cost = pl.CostEstimate(
        flops=7 * N * C,
        transcendentals=N * C,
        bytes_accessed=N * C * (jnp.dtype(logits.dtype).itemsize
                                + jnp.dtype(labels.dtype).itemsize) + N * 4,
    )

    if num_c == 1:
        # Single pass: whole class axis resident per block, batch axis parallel.
        row_loss = pl.pallas_call(
            _row_loss_single_pass_kernel,
            out_shape=out_shape,
            grid_spec=pltpu.PrefetchScalarGridSpec(
                num_scalar_prefetch=0,
                grid=(num_n,),
                in_specs=[pl.BlockSpec((tile_n, C), lambda i: (i, 0)),
                          pl.BlockSpec((tile_n, C), lambda i: (i, 0))],
                out_specs=pl.BlockSpec((tile_n, 1), lambda i: (i, 0)),
            ),
            compiler_params=pltpu.CompilerParams(
                dimension_semantics=("parallel",),
                vmem_limit_bytes=vmem_limit_bytes),
            cost_estimate=cost,
        )(logits, labels)
    else:
        # Streaming over class tiles (reduction axis last); batch axis parallel.
        row_loss = pl.pallas_call(
            _row_loss_streaming_kernel,
            out_shape=out_shape,
            grid_spec=pltpu.PrefetchScalarGridSpec(
                num_scalar_prefetch=0,
                grid=(num_n, num_c),
                in_specs=[pl.BlockSpec((tile_n, tile_c), lambda i, j: (i, j)),
                          pl.BlockSpec((tile_n, tile_c), lambda i, j: (i, j))],
                out_specs=pl.BlockSpec((tile_n, 1), lambda i, j: (i, 0)),
                scratch_shapes=[pltpu.VMEM((tile_n, 1), jnp.float32)] * 4,
            ),
            compiler_params=pltpu.CompilerParams(
                dimension_semantics=("parallel", "arbitrary"),
                vmem_limit_bytes=vmem_limit_bytes),
            cost_estimate=cost,
        )(logits, labels)

    # Final (tiny) reduction + mean over all N*C elements in the wrapper.
    return jnp.sum(row_loss) / jnp.float32(N * C)


def _reference(logits, labels):
    lsm = jax.nn.log_softmax(logits.astype(jnp.float32), axis=1)
    return jnp.mean(-lsm * labels.astype(jnp.float32))


if __name__ == "__main__":
    key = jax.random.PRNGKey(0)
    k1, k2, k3, k4 = jax.random.split(key, 4)

    # 1) default path (class axis resident, auto-sized batch tiles)
    N, C = 64, 32
    logits = jax.random.normal(k1, (N, C), dtype=jnp.float32)
    labels = jax.nn.softmax(jax.random.normal(k2, (N, C), dtype=jnp.float32),
                            axis=1)
    loss = soft_cross_entropy_loss(logits, labels)
    jax.block_until_ready(loss)
    ref = _reference(logits, labels)
    assert jnp.allclose(loss, ref, atol=1e-5, rtol=1e-5), (loss, ref)

    # 2) streaming path (class-tiled online logsumexp), forced via tile_c
    N2, C2 = 32, 256
    logits2 = jax.random.normal(k3, (N2, C2), dtype=jnp.float32)
    labels2 = jax.nn.softmax(jax.random.normal(k4, (N2, C2), dtype=jnp.float32),
                             axis=1)
    loss2 = soft_cross_entropy_loss(logits2, labels2, tile_n=16, tile_c=128)
    jax.block_until_ready(loss2)
    ref2 = _reference(logits2, labels2)
    assert jnp.allclose(loss2, ref2, atol=1e-5, rtol=1e-5), (loss2, ref2)

    # 3) bf16 inputs (half the HBM traffic; f32 math inside the kernel)
    loss_bf16 = soft_cross_entropy_loss(logits.astype(jnp.bfloat16),
                                        labels.astype(jnp.bfloat16))
    jax.block_until_ready(loss_bf16)
    ref_bf16 = _reference(logits.astype(jnp.bfloat16),
                          labels.astype(jnp.bfloat16))
    assert jnp.allclose(loss_bf16, ref_bf16, atol=1e-4, rtol=1e-4), (
        loss_bf16, ref_bf16)

    print("KERNEL_OK")
</pallas_src>

<mosaic_0001>
module attributes {stable_mosaic.version = 11 : i64} {
  func.func @_row_loss_single_pass_kernel(%arg0: i32, %arg1: memref<64x32xf32, #tpu.memory_space<vmem>>, %arg2: memref<64x32xf32, #tpu.memory_space<vmem>>, %arg3: memref<64x1xf32, #tpu.memory_space<vmem>>) attributes {dimension_semantics = [#tpu.dimension_semantics<parallel>], iteration_bounds = array<i64: 1>, scalar_prefetch = 0 : i64, scratch_operands = 0 : i64, tpu.core_type = #tpu.core_type<tc>, window_params = [{transform_indices = @transform_0, window_bounds = array<i64: 64, 32>}, {transform_indices = @transform_1, window_bounds = array<i64: 64, 32>}, {transform_indices = @transform_2, window_bounds = array<i64: 64, 1>}]} {
    %c0 = arith.constant 0 : index
    %c0_0 = arith.constant 0 : index
    %0 = vector.load %arg1[%c0, %c0_0] : memref<64x32xf32, #tpu.memory_space<vmem>>, vector<64x32xf32>
    %c0_1 = arith.constant 0 : index
    %c0_2 = arith.constant 0 : index
    %1 = vector.load %arg2[%c0_1, %c0_2] : memref<64x32xf32, #tpu.memory_space<vmem>>, vector<64x32xf32>
    %cst = arith.constant dense<0xFF800000> : vector<64xf32>
    %2 = vector.multi_reduction <maximumf>, %0, %cst [1] : vector<64x32xf32> to vector<64xf32>
    %3 = vector.shape_cast %2 : vector<64xf32> to vector<64x1xf32>
    %4 = vector.broadcast %3 : vector<64x1xf32> to vector<64x32xf32>
    %5 = arith.subf %0, %4 : vector<64x32xf32>
    %6 = math.exp %5 : vector<64x32xf32>
    %cst_3 = arith.constant dense<0.000000e+00> : vector<64xf32>
    %7 = vector.multi_reduction <add>, %6, %cst_3 [1] : vector<64x32xf32> to vector<64xf32>
    %8 = vector.shape_cast %7 : vector<64xf32> to vector<64x1xf32>
    %9 = math.log %8 : vector<64x1xf32>
    %10 = vector.broadcast %9 : vector<64x1xf32> to vector<64x32xf32>
    %11 = arith.subf %5, %10 : vector<64x32xf32>
    %cst_4 = arith.constant 0.000000e+00 : f32
    %12 = vector.broadcast %cst_4 : f32 to vector<64x32xf32>
    %13 = arith.subf %12, %11 : vector<64x32xf32>
    %14 = arith.mulf %13, %1 : vector<64x32xf32>
    %cst_5 = arith.constant dense<0.000000e+00> : vector<64xf32>
    %15 = vector.multi_reduction <add>, %14, %cst_5 [1] : vector<64x32xf32> to vector<64xf32>
    %16 = vector.shape_cast %15 : vector<64xf32> to vector<64x1xf32>
    %c0_6 = arith.constant 0 : index
    %c0_7 = arith.constant 0 : index
    %17 = vector.load %arg3[%c0_6, %c0_7] : memref<64x1xf32, #tpu.memory_space<vmem>>, vector<64x1xf32>
    tpu.vector_store %arg3[%c0_6, %c0_7], %16 {strides = array<i32>} : memref<64x1xf32, #tpu.memory_space<vmem>>, vector<64x1xf32>,
    return
  }
  func.func @transform_0(%arg0: i32) -> (i32, i32) {
    %c0_i32 = arith.constant 0 : i32
    %c0_i32_0 = arith.constant 0 : i32
    return %arg0, %c0_i32 : i32, i32
  }
  func.func @transform_1(%arg0: i32) -> (i32, i32) {
    %c0_i32 = arith.constant 0 : i32
    %c0_i32_0 = arith.constant 0 : i32
    return %arg0, %c0_i32 : i32, i32
  }
  func.func @transform_2(%arg0: i32) -> (i32, i32) {
    %c0_i32 = arith.constant 0 : i32
    %c0_i32_0 = arith.constant 0 : i32
    return %arg0, %c0_i32 : i32, i32
  }
}

</mosaic_0001>

<bundles_post_ra>
// kernel: tpu_custom_call.1
= control target key start
LH: loop header
LB: loop body
LE: loop exit
PB: predicated region body
PF: predicated region fallthrough
CT: control target
= control target key end

     0   :  { %vm27_vm0 = vcmask 261120   ;;  %vm164_vm1 = vcmask 7168   ;;  %s360_s0 = inlined_call_operand.vmem [shape: f32[64,32], index: 0, kind: input, shape index: {}]   ;;  %s361_s1 = inlined_call_operand.vmem [shape: f32[64,32], index: 1, kind: input, shape index: {}]   ;;  %s362_s2 = inlined_call_operand.vmem [shape: f32[64,1], index: 2, kind: output, shape index: {}]  }
   0x1   :  { %v11_v0 = vld [vmem:[%s360_s0] sm:$0xff]  ;;  %v13_v1 = vld [vmem:[%s360_s0 + $0x10] sm:$0xff]  ;;  %v12_v2 = vld [vmem:[%s360_s0 + $0x8] sm:$0xff] }
   0x2   :  { %v28_v3 = vsel %vm27_vm0, %v11_v0, -inf  ;;  %v34_v4 = vsel %vm27_vm0, %v13_v1, -inf  ;;  %v14_v5 = vld [vmem:[%s360_s0 + $0x18] sm:$0xff]  ;;  %v31_v6 = vsel %vm27_vm0, %v12_v2, -inf  ;;  %v15_v8 = vld [vmem:[%s360_s0 + $0x20] sm:$0xff]  ;;  %v16_v9 = vld [vmem:[%s360_s0 + $0x28] sm:$0xff] }
   0x3   :  { %29 = vmax.xlane.f32.xlu0 %v28_v3  ;;  %35 = vmax.xlane.f32.xlu1 %v34_v4  ;;  %v37_v7 = vsel %vm27_vm0, %v14_v5, -inf  ;;  %v40_v10 = vsel %vm27_vm0, %v15_v8, -inf  ;;  %v43_v11 = vsel %vm27_vm0, %v16_v9, -inf  ;;  %v17_v12 = vld [vmem:[%s360_s0 + $0x30] sm:$0xff]  ;;  %v18_v13 = vld [vmem:[%s360_s0 + $0x38] sm:$0xff]  ;;  %v19_v4 = vld [vmem:[%s361_s1] sm:$0xff] }
   0x4   :  { %v46_v14 = vsel %vm27_vm0, %v17_v12, -inf  ;;  %v49_v15 = vsel %vm27_vm0, %v18_v13, -inf }
   0x7   :  { %32 = vmax.xlane.f32.xlu0 %v31_v6  ;;  %38 = vmax.xlane.f32.xlu1 %v37_v7 }
   0xb   :  { %41 = vmax.xlane.f32.xlu0 %v40_v10  ;;  %44 = vmax.xlane.f32.xlu1 %v43_v11 }
   0xf   :  { %47 = vmax.xlane.f32.xlu0 %v46_v14  ;;  %50 = vmax.xlane.f32.xlu1 %v49_v15 }
  0x8c   :  { %v30_v16 = vpop.xlane.xlu0 %29  ;;  %v36_v17 = vpop.xlane.xlu1 %35 }
  0x8d   :  { %v256_v18 = vsub.f32 %v11_v0, %v30_v16  ;;  %v258_v19 = vsub.f32 %v13_v1, %v36_v17 }
  0x8f   :  { %v60_v20 = vmul.f32 1.442695, %v256_v18  ;;  %v64_v21 = vmul.f32 1.442695, %v258_v19 }
  0x90   :  { %v33_v22 = vpop.xlane.xlu0 %32  ;;  %v39_v23 = vpop.xlane.xlu1 %38 }
  0x91   :  { %177 = vpow2.f32 %v60_v20  ;;  %v262_v24 = vsub.f32 %v12_v2, %v33_v22  ;;  %v264_v25 = vsub.f32 %v14_v5, %v39_v23 }
  0x92   :  { %179 = vpow2.f32 %v64_v21 }
  0x93   :  { %v62_v26 = vmul.f32 1.442695, %v262_v24  ;;  %v66_v27 = vmul.f32 1.442695, %v264_v25 }
  0x94   :  { %v42_v28 = vpop.xlane.xlu0 %41  ;;  %v45_v29 = vpop.xlane.xlu1 %44 }
  0x95   :  { %181 = vpow2.f32 %v62_v26  ;;  %v268_v30 = vsub.f32 %v15_v8, %v42_v28  ;;  %v270_v31 = vsub.f32 %v16_v9, %v45_v29 }
  0x96   :  { %183 = vpow2.f32 %v66_v27 }
  0x97   :  { %v68_v32 = vmul.f32 1.442695, %v268_v30  ;;  %v70_v33 = vmul.f32 1.442695, %v270_v31 }
  0x98   :  { %v48_v34 = vpop.xlane.xlu0 %47  ;;  %v51_v35 = vpop.xlane.xlu1 %50 }
  0x99   :  { %185 = vpow2.f32 %v68_v32  ;;  %v274_v36 = vsub.f32 %v17_v12, %v48_v34  ;;  %v276_v37 = vsub.f32 %v18_v13, %v51_v35  ;;  %v20_v12 = vld [vmem:[%s361_s1 + $0x8] sm:$0xff]  ;;  %v23_v34 = vld [vmem:[%s361_s1 + $0x20] sm:$0xff] }
  0x9a   :  { %187 = vpow2.f32 %v70_v33 }
  0x9b   :  { %v72_v38 = vmul.f32 1.442695, %v274_v36  ;;  %v74_v39 = vmul.f32 1.442695, %v276_v37 }
  0x9d   :  { %189 = vpow2.f32 %v72_v38 }
  0x9e   :  { %v178_v40 = vpop.eup %177  ;;  %191 = vpow2.f32 %v74_v39 }
  0x9f   :  { %v180_v41 = vpop.eup %179  ;;  %v76_v42 = vsel %vm27_vm0, %v178_v40, 0.0 }
  0xa0   :  { %77 = vadd.xlane.f32.xlu0 %v76_v42  ;;  %v82_v43 = vsel %vm27_vm0, %v180_v41, 0.0  ;;  %v24_v42 = vld [vmem:[%s361_s1 + $0x28] sm:$0xff] }
  0xa2   :  { %v182_v44 = vpop.eup %181 }
  0xa3   :  { %v184_v45 = vpop.eup %183  ;;  %v79_v46 = vsel %vm27_vm0, %v182_v44, 0.0 }
  0xa4   :  { %83 = vadd.xlane.f32.xlu0 %v82_v43  ;;  %80 = vadd.xlane.f32.xlu1 %v79_v46  ;;  %v85_v47 = vsel %vm27_vm0, %v184_v45, 0.0 }
  0xa6   :  { %v186_v48 = vpop.eup %185 }
  0xa7   :  { %v188_v49 = vpop.eup %187  ;;  %v88_v50 = vsel %vm27_vm0, %v186_v48, 0.0 }
  0xa8   :  { %86 = vadd.xlane.f32.xlu1 %v85_v47  ;;  %89 = vadd.xlane.f32.xlu0 %v88_v50  ;;  %v91_v51 = vsel %vm27_vm0, %v188_v49, 0.0  ;;  %v25_v47 = vld [vmem:[%s361_s1 + $0x30] sm:$0xff] }
  0xaa   :  { %v190_v52 = vpop.eup %189 }
  0xab   :  { %v192_v53 = vpop.eup %191  ;;  %v94_v54 = vsel %vm27_vm0, %v190_v52, 0.0 }
  0xac   :  { %92 = vadd.xlane.f32.xlu1 %v91_v51  ;;  %95 = vadd.xlane.f32.xlu0 %v94_v54  ;;  %v97_v55 = vsel %vm27_vm0, %v192_v53, 0.0 }
  0xb0   :  { %98 = vadd.xlane.f32.xlu1 %v97_v55 }
 0x129   :  { %v78_v56 = vpop.xlane.xlu0 %77 }
 0x12a   :  { %193 = vlog2.f32 %v78_v56 }
 0x12d   :  { %v81_v57 = vpop.xlane.xlu1 %80  ;;  %v84_v58 = vpop.xlane.xlu0 %83 }
 0x12e   :  { %195 = vlog2.f32 %v81_v57 }
 0x12f   :  { %197 = vlog2.f32 %v84_v58 }
 0x131   :  { %v87_v59 = vpop.xlane.xlu1 %86  ;;  %v90_v60 = vpop.xlane.xlu0 %89 }
 0x132   :  { %199 = vlog2.f32 %v87_v59 }
 0x133   :  { %201 = vlog2.f32 %v90_v60 }
 0x135   :  { %v93_v61 = vpop.xlane.xlu1 %92  ;;  %v96_v62 = vpop.xlane.xlu0 %95 }
 0x136   :  { %203 = vlog2.f32 %v93_v61 }
 0x137   :  { %v194_v63 = vpop.eup %193  ;;  %205 = vlog2.f32 %v96_v62 }
 0x138   :  { %v101_v0 = vmul.f32 0.6931472, %v194_v63 }
 0x139   :  { %v99_v1 = vpop.xlane.xlu1 %98 }
 0x13a   :  { %207 = vlog2.f32 %v99_v1  ;;  %v116_v2 = vsub.f32 %v256_v18, %v101_v0  ;;  %v21_v18 = vld [vmem:[%s361_s1 + $0x10] sm:$0xff] }
 0x13b   :  { %v196_v3 = vpop.eup %195 }
 0x13c   :  { %v198_v5 = vpop.eup %197  ;;  %v103_v6 = vmul.f32 0.6931472, %v196_v3  ;;  %v124_v7 = vsub.f32 0.0, %v116_v2 }
 0x13d   :  { %v105_v8 = vmul.f32 0.6931472, %v198_v5 }
 0x13e   :  { %v132_v9 = vmul.f32 %v124_v7, %v19_v4  ;;  %v117_v10 = vsub.f32 %v262_v24, %v103_v6 }
 0x13f   :  { %v200_v11 = vpop.eup %199  ;;  %v118_v13 = vsub.f32 %v258_v19, %v105_v8  ;;  %v22_v19 = vld [vmem:[%s361_s1 + $0x18] sm:$0xff] }
 0x140   :  { %v202_v14 = vpop.eup %201  ;;  %v107_v15 = vmul.f32 0.6931472, %v200_v11  ;;  %v140_v16 = vsel %vm27_vm0, %v132_v9, 0.0  ;;  %v125_v17 = vsub.f32 0.0, %v117_v10 }
 0x141   :  { %v109_v20 = vmul.f32 0.6931472, %v202_v14  ;;  %141 = vadd.xlane.f32.xlu0 %v140_v16  ;;  %v126_v21 = vsub.f32 0.0, %v118_v13 }
 0x142   :  { %v133_v22 = vmul.f32 %v125_v17, %v20_v12  ;;  %v119_v23 = vsub.f32 %v264_v25, %v107_v15 }
 0x143   :  { %v204_v24 = vpop.eup %203  ;;  %v134_v26 = vmul.f32 %v126_v21, %v21_v18  ;;  %v120_v27 = vsub.f32 %v268_v30, %v109_v20 }
 0x144   :  { %v206_v28 = vpop.eup %205  ;;  %v111_v29 = vmul.f32 0.6931472, %v204_v24  ;;  %v143_v32 = vsel %vm27_vm0, %v133_v22, 0.0  ;;  %v127_v33 = vsub.f32 0.0, %v119_v23 }
 0x145   :  { %v113_v35 = vmul.f32 0.6931472, %v206_v28  ;;  %144 = vadd.xlane.f32.xlu1 %v143_v32  ;;  %v146_v25 = vsel %vm27_vm0, %v134_v26, 0.0  ;;  %v128_v38 = vsub.f32 0.0, %v120_v27 }
 0x146   :  { %147 = vadd.xlane.f32.xlu0 %v146_v25  ;;  %v135_v39 = vmul.f32 %v127_v33, %v22_v19  ;;  %v121_v40 = vsub.f32 %v270_v31, %v111_v29 }
 0x147   :  { %v208_v41 = vpop.eup %207  ;;  %v136_v30 = vmul.f32 %v128_v38, %v23_v34  ;;  %v122_v43 = vsub.f32 %v274_v36, %v113_v35  ;;  %v26_v36 = vld [vmem:[%s361_s1 + $0x38] sm:$0xff] }
 0x148   :  { %v115_v44 = vmul.f32 0.6931472, %v208_v41  ;;  %v149_v45 = vsel %vm27_vm0, %v135_v39, 0.0  ;;  %v129_v46 = vsub.f32 0.0, %v121_v40 }
 0x149   :  { %150 = vadd.xlane.f32.xlu1 %v149_v45  ;;  %v152_v48 = vsel %vm27_vm0, %v136_v30, 0.0  ;;  %v130_v31 = vsub.f32 0.0, %v122_v43 }
 0x14a   :  { %153 = vadd.xlane.f32.xlu0 %v152_v48  ;;  %v137_v49 = vmul.f32 %v129_v46, %v24_v42  ;;  %v123_v50 = vsub.f32 %v276_v37, %v115_v44 }
 0x14b   :  { %v138_v51 = vmul.f32 %v130_v31, %v25_v47 }
 0x14c   :  { %v155_v52 = vsel %vm27_vm0, %v137_v49, 0.0  ;;  %v131_v53 = vsub.f32 0.0, %v123_v50 }
 0x14d   :  { %156 = vadd.xlane.f32.xlu1 %v155_v52  ;;  %v158_v54 = vsel %vm27_vm0, %v138_v51, 0.0 }
 0x14e   :  { %159 = vadd.xlane.f32.xlu0 %v158_v54  ;;  %v139_v55 = vmul.f32 %v131_v53, %v26_v36 }
 0x150   :  { %v161_v56 = vsel %vm27_vm0, %v139_v55, 0.0 }
 0x151   :  { %162 = vadd.xlane.f32.xlu1 %v161_v56 }
 0x1ca   :  { %v142_v57 = vpop.xlane.xlu0 %141 }
 0x1cb   :  { %165 = vst.msk [vmem:[%s362_s2] sm:$0xff] %vm164_vm1, %v142_v57 }
 0x1ce   :  { %v145_v37 = vpop.xlane.xlu1 %144 }
 0x1cf   :  { %166 = vst.msk [vmem:[%s362_s2 + $0x8] sm:$0xff] %vm164_vm1, %v145_v37  ;;  %v148_v58 = vpop.xlane.xlu0 %147 }
 0x1d0   :  { %167 = vst.msk [vmem:[%s362_s2 + $0x10] sm:$0xff] %vm164_vm1, %v148_v58 }
 0x1d2   :  { %v151_v59 = vpop.xlane.xlu1 %150 }
 0x1d3   :  { %168 = vst.msk [vmem:[%s362_s2 + $0x18] sm:$0xff] %vm164_vm1, %v151_v59  ;;  %v154_v60 = vpop.xlane.xlu0 %153 }
 0x1d4   :  { %169 = vst.msk [vmem:[%s362_s2 + $0x20] sm:$0xff] %vm164_vm1, %v154_v60 }
 0x1d6   :  { %v157_v61 = vpop.xlane.xlu1 %156 }
 0x1d7   :  { %170 = vst.msk [vmem:[%s362_s2 + $0x28] sm:$0xff] %vm164_vm1, %v157_v61  ;;  %v160_v62 = vpop.xlane.xlu0 %159 }
 0x1d8   :  { %171 = vst.msk [vmem:[%s362_s2 + $0x30] sm:$0xff] %vm164_vm1, %v160_v62 }
 0x1da   :  { %v163_v63 = vpop.xlane.xlu1 %162 }
 0x1db   :  { %172 = vst.msk [vmem:[%s362_s2 + $0x38] sm:$0xff] %vm164_vm1, %v163_v63 }

</bundles_post_ra>
